<compile_context>
chip_gen: v6e
topology: v6e:2x2x1
jax: 0.10.0
libtpu: 0.0.40
codegen_flags: <defaults>
</compile_context>

<pallas_src>
import functools
import math

import jax
import jax.numpy as jnp
from jax.experimental import pallas as pl
from jax.experimental.pallas import tpu as pltpu


def _vmem_limit_bytes():
    """Scoped-VMEM budget: <= half the physical VMEM (v7x: 64 MiB/TC,
    v5e/v6e: 128 MiB), never below 32 MiB."""
    try:
        phys = pltpu.get_tpu_info().vmem_capacity_bytes
    except Exception:
        phys = 64 * 1024 * 1024          # conservative (v7x-sized) fallback
    return int(min(64 * 1024 * 1024, max(32 * 1024 * 1024, phys // 2)))


# ----------------------------------------------------------------------------
# Kernel 1: mean-reduced softmax cross-entropy (nn.CrossEntropyLoss)
#           - integer labels, class axis tiled with an online LSE
# ----------------------------------------------------------------------------
def _ce_kernel(labels_ref, logits_ref, out_ref, m_sc, s_sc, p_sc, *, num_classes):
    c_idx = pl.program_id(0)
    n_c = pl.num_programs(0)

    @pl.when(c_idx == 0)
    def _init():
        m_sc[...] = jnp.full_like(m_sc, -jnp.inf)
        s_sc[...] = jnp.zeros_like(s_sc)
        p_sc[...] = jnp.zeros_like(p_sc)

    blk = logits_ref[...].astype(jnp.float32)                     # [B, TILE_C]
    b, tile_c = blk.shape
    col = c_idx * tile_c + jax.lax.broadcasted_iota(jnp.int32, (b, tile_c), 1)
    valid = col < num_classes
    blk = jnp.where(valid, blk, -jnp.inf)                         # padded cols -> -inf
    labels = labels_ref[...]                                      # [B, 1] int32

    m_new = jnp.maximum(m_sc[...], jnp.max(blk, axis=-1, keepdims=True))
    s_sc[...] = s_sc[...] * jnp.exp(m_sc[...] - m_new) + jnp.sum(
        jnp.exp(blk - m_new), axis=-1, keepdims=True)
    p_sc[...] += jnp.sum(jnp.where((col == labels) & valid, blk, 0.0),
                         axis=-1, keepdims=True)
    m_sc[...] = m_new

    @pl.when(c_idx == n_c - 1)
    def _finalize():
        # NOTE: /b is the full batch -- correct because the batch axis is never
        # tiled in this kernel.
        nll = m_sc[...] + jnp.log(s_sc[...]) - p_sc[...]          # [B, 1]
        out_ref[...] = jnp.sum(nll, axis=(0, 1), keepdims=True) / b


def cross_entropy_loss(logits, labels, *, tile_c=None):
    """logits: [B, C] (any float dtype); labels: [B] int."""
    B, C = logits.shape
    if tile_c is None:
        # One shot whenever the class axis fits comfortably in VMEM (it does for
        # B*C*4 well into the 100K-class range); otherwise an 8192-wide tile so
        # the per-step LSE rescale and the 0.35us/step overhead are amortised.
        tile_c = C if C <= 8192 else 8192
    labels2d = labels.astype(jnp.int32).reshape(B, 1)

    out = pl.pallas_call(
        functools.partial(_ce_kernel, num_classes=C),
        out_shape=jax.ShapeDtypeStruct((1, 1), jnp.float32),
        grid=(pl.cdiv(C, tile_c),),
        in_specs=[
            pl.BlockSpec((B, 1), lambda c: (0, 0)),        # labels, resident
            pl.BlockSpec((B, tile_c), lambda c: (0, c)),   # logits, streamed over C
        ],
        out_specs=pl.BlockSpec((1, 1), lambda c: (0, 0)),
        scratch_shapes=[pltpu.VMEM((B, 1), jnp.float32)] * 3,
        compiler_params=pltpu.CompilerParams(
            dimension_semantics=("arbitrary",),
            vmem_limit_bytes=_vmem_limit_bytes(),
        ),
    )(labels2d, logits)
    return out[0, 0]


# ----------------------------------------------------------------------------
# Kernel 2: saliency punish/reward partial sums, streamed over F and sharded
#           over a leading "parallel" axis (engages both TCs on v7x).
#           Emits per-shard, per-sample [pm_count, rm_count, punish, reward].
# ----------------------------------------------------------------------------
def _punisher_saliency_kernel(grad_ref, mask_ref, out_ref,
                              pm_acc, rm_acc, pg_acc, rr_acc, *, total_f):
    s = pl.program_id(0)                      # shard (parallel)
    f = pl.program_id(1)                      # streaming step within shard
    n_f = pl.num_programs(1)
    b, tile_f = grad_ref.shape
    gb = s * n_f + f                          # logical (unclamped) global block

    @pl.when(f == 0)
    def _init():
        pm_acc[...] = jnp.zeros_like(pm_acc)
        rm_acc[...] = jnp.zeros_like(rm_acc)
        pg_acc[...] = jnp.zeros_like(pg_acc)
        rr_acc[...] = jnp.zeros_like(rr_acc)

    def _accumulate(g, pos, neg):
        # g: [B, tile_f] f32; pos/neg: [B, tile_f] bool. pos/neg gate everything,
        # so garbage in a padded tail never reaches an accumulator.
        g2 = g * g
        inv = 1.0 / (1.0 + g2)                # exact: matches torch 1/(1+g^2)
        pm_acc[...] += jnp.sum(pos.astype(jnp.float32), axis=-1, keepdims=True)
        rm_acc[...] += jnp.sum(neg.astype(jnp.float32), axis=-1, keepdims=True)
        pg_acc[...] += jnp.sum(jnp.where(pos, g2, 0.0), axis=-1, keepdims=True)
        rr_acc[...] += jnp.sum(jnp.where(neg, inv, 0.0), axis=-1, keepdims=True)

    needs_mask = (gb + 1) * tile_f > total_f

    @pl.when(jnp.logical_not(needs_mask))
    def _steady():
        # Hot path: no iota / padding compare / padding select.
        m = mask_ref[...]
        _accumulate(grad_ref[...].astype(jnp.float32), m > 0, m < 0)

    @pl.when(needs_mask)
    def _edge():
        # At most one partially-valid (or fully phantom) block per shard.
        col = gb * tile_f + jax.lax.broadcasted_iota(jnp.int32, (b, tile_f), 1)
        valid = col < total_f
        m = mask_ref[...]
        _accumulate(grad_ref[...].astype(jnp.float32),
                    valid & (m > 0), valid & (m < 0))

    @pl.when(f == n_f - 1)
    def _finalize():
        out_ref[0, :, 0:1] = pm_acc[...]
        out_ref[0, :, 1:2] = rm_acc[...]
        out_ref[0, :, 2:3] = pg_acc[...]
        out_ref[0, :, 3:4] = rr_acc[...]


def punisher_path_loss(gradients, marked_pixels, logits, labels, *,
                       tile_f=None, num_shards=None,
                       alpha=0.2, beta=1.0, saliency_scale_factor=10000.0):
    """gradients: [B, C, H, W] (native dtype, f32 or bf16);
    marked_pixels: [B, C, H, W] int8 in {-1, 0, +1} (float accepted, cast once);
    logits: [B, num_classes]; labels: [B] int."""
    B = gradients.shape[0]
    F = int(math.prod(gradients.shape[1:]))
    g2d = gradients.reshape(B, F)             # stream native dtype (bf16 halves HBM)
    m2d = marked_pixels.reshape(B, F)
    if not jnp.issubdtype(m2d.dtype, jnp.integer):
        # TODO(synk): ideally the annotation pipeline produces int8 directly.
        m2d = jnp.sign(m2d).astype(jnp.int8)
    else:
        m2d = m2d.astype(jnp.int8)

    bytes_per_elem = g2d.dtype.itemsize + 1   # gradient + int8 mask
    vmem_limit = _vmem_limit_bytes()

    if tile_f is None:
        # Target ~2-4 MiB streamed per grid step to amortise the ~0.35us fixed
        # per-step cost (review: >=85% of the HBM roofline once tiles are this
        # large), capped at 64K lanes.
        target_bytes = 4 * 1024 * 1024
        tile_f = (target_bytes // (B * bytes_per_elem)) // 128 * 128
        tile_f = int(max(1024, min(tile_f, 65536)))
    # Keep the double-buffered streamed working set comfortably inside the
    # scoped-VMEM budget (matters on v7x's 64 MiB physical VMEM).
    cap = ((vmem_limit // 2) // (2 * B * bytes_per_elem)) // 128 * 128
    tile_f = int(min(tile_f, max(128, cap)))
    if tile_f >= F:
        tile_f = F                            # single full block (any width OK)
    else:
        tile_f = max(128, (tile_f // 128) * 128)   # lane-multiple when tiling

    n_blocks = pl.cdiv(F, tile_f)
    if num_shards is None:
        # Two shards engage both TensorCores on v7x; on 1-TC chips (v5e/v6e)
        # the extra shard is a near-free serial iteration, so only split when
        # there is real work to split.
        num_shards = 2 if n_blocks >= 4 else 1
    num_shards = max(1, min(int(num_shards), n_blocks))
    spb = pl.cdiv(n_blocks, num_shards)       # streaming steps per shard
    max_block = n_blocks - 1

    def _stream_map(s, f):
        # Clamp so the padded (phantom) steps of the last shard stay in-bounds;
        # their contributions are masked to zero in-kernel.
        return (0, jnp.minimum(s * spb + f, max_block))

    parts = pl.pallas_call(
        functools.partial(_punisher_saliency_kernel, total_f=F),
        out_shape=jax.ShapeDtypeStruct((num_shards, B, 4), jnp.float32),
        grid=(num_shards, spb),
        in_specs=[
            pl.BlockSpec((B, tile_f), _stream_map),   # gradients, streamed
            pl.BlockSpec((B, tile_f), _stream_map),   # int8 mask, streamed
        ],
        out_specs=pl.BlockSpec((1, B, 4), lambda s, f: (s, 0, 0)),
        scratch_shapes=[pltpu.VMEM((B, 1), jnp.float32)] * 4,
        compiler_params=pltpu.CompilerParams(
            dimension_semantics=("parallel", "arbitrary"),
            vmem_limit_bytes=vmem_limit,
        ),
    )(g2d, m2d)

    # Tiny epilogue: combine shard partials, per-sample divides, batch mean, and
    # the classification cross-entropy (its own Pallas kernel).  Normalisation
    # lives here, so it stays correct regardless of how F/B are sharded.
    totals = jnp.sum(parts, axis=0)                    # [B, 4]
    pm, rm = totals[:, 0], totals[:, 1]
    pg, rr = totals[:, 2], totals[:, 3]
    per_sample = pg / (pm + 1e-8) + rr / (rm + 1e-8)   # [B]
    avg_saliency = jnp.mean(per_sample)

    ce = cross_entropy_loss(logits, labels)
    return alpha * ce + beta * (avg_saliency * saliency_scale_factor)


# ----------------------------------------------------------------------------
# Forward wrapper mirroring PunisherLoss.forward control flow
# ----------------------------------------------------------------------------
def punisher_loss_forward(
    inputs,               # model-output logits [B, num_classes]
    targets,              # integer class labels [B]
    epoch,
    number,
    decide_callback,
    gradients=None,       # saliency gradients [Bt, C, H, W] (annotated batch)
    marked_pixels=None,   # user markings      [Bt, C, H, W] int8 in {-1, 0, +1}
    tile_f=None,
    num_shards=None,
):
    # TODO(synk): the module's self.number bookkeeping / epoch reset is host-side
    # Python state; it is passed in explicitly here.
    if decide_callback(epoch, number):
        return punisher_path_loss(gradients, marked_pixels, inputs, targets,
                                  tile_f=tile_f, num_shards=num_shards)
    else:
        return cross_entropy_loss(inputs, targets)


if __name__ == "__main__":
    key = jax.random.PRNGKey(0)
    k1, k2, k3, k4, k5, k6 = jax.random.split(key, 6)

    B, NUM_CLASSES = 4, 10
    C, H, W = 3, 16, 17            # F = 816: with tile_f=384 -> 3 real blocks
                                   # (last one partial) + 1 phantom block on the
                                   # second shard, exercising every masking path.

    logits = jax.random.normal(k1, (B, NUM_CLASSES), dtype=jnp.float32)
    labels = jax.random.randint(k2, (B,), 0, NUM_CLASSES)

    gradients = jax.random.normal(k3, (B, C, H, W), dtype=jnp.float32)
    marked_pixels = jax.random.randint(k4, (B, C, H, W), -1, 2).astype(jnp.int8)

    decide_callback = lambda epoch, number: (number % 16) == 0

    # (a) default CrossEntropyLoss path (decide_callback False)
    loss_default = punisher_loss_forward(
        logits, labels, epoch=0, number=3, decide_callback=decide_callback)

    # CE with a forced small class tile -> exercises the online-LSE grid path.
    BIG_C = 300
    logits_big = jax.random.normal(k5, (B, BIG_C), dtype=jnp.float32)
    labels_big = jax.random.randint(k6, (B,), 0, BIG_C)
    loss_ce_big = cross_entropy_loss(logits_big, labels_big, tile_c=128)

    # (b) punisher path, auto config (single block, single shard, fast path)
    loss_pun_auto = punisher_loss_forward(
        logits, labels, epoch=0, number=0, decide_callback=decide_callback,
        gradients=gradients, marked_pixels=marked_pixels)

    # (b') punisher path, forced multi-block + 2 shards (edge mask + phantom)
    loss_pun_tiled = punisher_loss_forward(
        logits, labels, epoch=0, number=0, decide_callback=decide_callback,
        gradients=gradients, marked_pixels=marked_pixels,
        tile_f=384, num_shards=2)

    # (b'') bf16 gradient streaming (halves the dominant HBM traffic)
    loss_pun_bf16 = punisher_path_loss(
        gradients.astype(jnp.bfloat16), marked_pixels, logits, labels,
        tile_f=384, num_shards=2)

    jax.block_until_ready(loss_default)
    jax.block_until_ready(loss_ce_big)
    jax.block_until_ready(loss_pun_auto)
    jax.block_until_ready(loss_pun_tiled)
    jax.block_until_ready(loss_pun_bf16)

    # -------------------- pure-JAX references --------------------
    def ce_ref(lg, lb):
        picked = jnp.take_along_axis(lg, lb[:, None], axis=1)[:, 0]
        return jnp.mean(jax.nn.logsumexp(lg, axis=-1) - picked)

    def punisher_ref(grads_f32_2d):
        m2d = marked_pixels.reshape(B, -1).astype(jnp.float32)
        pm = (m2d > 0).astype(jnp.float32)
        rm = (m2d < 0).astype(jnp.float32)
        g = grads_f32_2d
        per = (jnp.sum(pm * g**2, -1) / (jnp.sum(pm, -1) + 1e-8)
               + jnp.sum(rm * (1.0 / (1.0 + g**2)), -1) / (jnp.sum(rm, -1) + 1e-8))
        return 0.2 * ce_ref(logits, labels) + 1.0 * (jnp.mean(per) * 10000.0)

    ref_ce_small = ce_ref(logits, labels)
    ref_ce_big = ce_ref(logits_big, labels_big)
    ref_pun_f32 = punisher_ref(gradients.reshape(B, -1).astype(jnp.float32))
    ref_pun_bf16 = punisher_ref(
        gradients.astype(jnp.bfloat16).astype(jnp.float32).reshape(B, -1))

    assert jnp.allclose(loss_default, ref_ce_small, rtol=1e-5, atol=1e-5), (
        loss_default, ref_ce_small)
    assert jnp.allclose(loss_ce_big, ref_ce_big, rtol=1e-5, atol=1e-5), (
        loss_ce_big, ref_ce_big)
    assert jnp.allclose(loss_pun_auto, ref_pun_f32, rtol=1e-4, atol=1e-3), (
        loss_pun_auto, ref_pun_f32)
    assert jnp.allclose(loss_pun_tiled, ref_pun_f32, rtol=1e-4, atol=1e-3), (
        loss_pun_tiled, ref_pun_f32)
    assert jnp.allclose(loss_pun_bf16, ref_pun_bf16, rtol=1e-4, atol=1e-3), (
        loss_pun_bf16, ref_pun_bf16)

    print("KERNEL_OK")
</pallas_src>

<mosaic_0001>
module attributes {stable_mosaic.version = 11 : i64} {
  func.func @_ce_kernel(%arg0: i32, %arg1: memref<4x1xi32, #tpu.memory_space<vmem>>, %arg2: memref<4x10xf32, #tpu.memory_space<vmem>>, %arg3: memref<1x1xf32, #tpu.memory_space<vmem>>, %arg4: memref<4x1xf32, #tpu.memory_space<vmem>>, %arg5: memref<4x1xf32, #tpu.memory_space<vmem>>, %arg6: memref<4x1xf32, #tpu.memory_space<vmem>>) attributes {dimension_semantics = [#tpu.dimension_semantics<arbitrary>], iteration_bounds = array<i64: 1>, scalar_prefetch = 0 : i64, scratch_operands = 3 : i64, tpu.core_type = #tpu.core_type<tc>, window_params = [{pipeline_mode = #tpu.pipeline_mode<synchronous>, transform_indices = @transform_0, window_bounds = array<i64: 4, 1>}, {transform_indices = @transform_1, window_bounds = array<i64: 4, 10>}, {pipeline_mode = #tpu.pipeline_mode<synchronous>, transform_indices = @transform_2, window_bounds = array<i64: 1, 1>}]} {
    %c0_i32 = arith.constant 0 : i32
    %0 = arith.cmpi eq, %arg0, %c0_i32 : i32
    %1 = arith.extui %0 : i1 to i32
    %c0_i32_0 = arith.constant 0 : i32
    %2 = arith.cmpi ne, %1, %c0_i32_0 : i32
    scf.if %2 {
      %cst_25 = arith.constant 0xFF800000 : f32
      %43 = vector.broadcast %cst_25 : f32 to vector<4x1xf32>
      %c0_26 = arith.constant 0 : index
      %c0_27 = arith.constant 0 : index
      %44 = vector.load %arg4[%c0_26, %c0_27] : memref<4x1xf32, #tpu.memory_space<vmem>>, vector<4x1xf32>
      tpu.vector_store %arg4[%c0_26, %c0_27], %43 {strides = array<i32>} : memref<4x1xf32, #tpu.memory_space<vmem>>, vector<4x1xf32>,
      %cst_28 = arith.constant 0.000000e+00 : f32
      %45 = vector.broadcast %cst_28 : f32 to vector<4x1xf32>
      %c0_29 = arith.constant 0 : index
      %c0_30 = arith.constant 0 : index
      %46 = vector.load %arg5[%c0_29, %c0_30] : memref<4x1xf32, #tpu.memory_space<vmem>>, vector<4x1xf32>
      tpu.vector_store %arg5[%c0_29, %c0_30], %45 {strides = array<i32>} : memref<4x1xf32, #tpu.memory_space<vmem>>, vector<4x1xf32>,
      %cst_31 = arith.constant 0.000000e+00 : f32
      %47 = vector.broadcast %cst_31 : f32 to vector<4x1xf32>
      %c0_32 = arith.constant 0 : index
      %c0_33 = arith.constant 0 : index
      %48 = vector.load %arg6[%c0_32, %c0_33] : memref<4x1xf32, #tpu.memory_space<vmem>>, vector<4x1xf32>
      tpu.vector_store %arg6[%c0_32, %c0_33], %47 {strides = array<i32>} : memref<4x1xf32, #tpu.memory_space<vmem>>, vector<4x1xf32>,
    } else {
    }
    %c0 = arith.constant 0 : index
    %c0_1 = arith.constant 0 : index
    %3 = vector.load %arg2[%c0, %c0_1] : memref<4x10xf32, #tpu.memory_space<vmem>>, vector<4x10xf32>
    %c10_i32 = arith.constant 10 : i32
    %4 = arith.muli %arg0, %c10_i32 : i32
    %5 = tpu.iota {dimensions = array<i32: 1>} : vector<4x10xi32>
    %6 = vector.broadcast %4 : i32 to vector<4x10xi32>
    %7 = arith.addi %6, %5 : vector<4x10xi32>
    %c10_i32_2 = arith.constant 10 : i32
    %8 = vector.broadcast %c10_i32_2 : i32 to vector<4x10xi32>
    %9 = arith.cmpi slt, %7, %8 : vector<4x10xi32>
    %cst = arith.constant 0xFF800000 : f32
    %10 = vector.broadcast %cst : f32 to vector<4x10xf32>
    %11 = arith.select %9, %3, %10 : vector<4x10xi1>, vector<4x10xf32>
    %c0_3 = arith.constant 0 : index
    %c0_4 = arith.constant 0 : index
    %12 = vector.load %arg1[%c0_3, %c0_4] : memref<4x1xi32, #tpu.memory_space<vmem>>, vector<4x1xi32>
    %c0_5 = arith.constant 0 : index
    %c0_6 = arith.constant 0 : index
    %13 = vector.load %arg4[%c0_5, %c0_6] : memref<4x1xf32, #tpu.memory_space<vmem>>, vector<4x1xf32>
    %cst_7 = arith.constant dense<0xFF800000> : vector<4xf32>
    %14 = vector.multi_reduction <maximumf>, %11, %cst_7 [1] : vector<4x10xf32> to vector<4xf32>
    %15 = vector.shape_cast %14 : vector<4xf32> to vector<4x1xf32>
    %16 = arith.maximumf %13, %15 : vector<4x1xf32>
    %c0_8 = arith.constant 0 : index
    %c0_9 = arith.constant 0 : index
    %17 = vector.load %arg5[%c0_8, %c0_9] : memref<4x1xf32, #tpu.memory_space<vmem>>, vector<4x1xf32>
    %c0_10 = arith.constant 0 : index
    %c0_11 = arith.constant 0 : index
    %18 = vector.load %arg4[%c0_10, %c0_11] : memref<4x1xf32, #tpu.memory_space<vmem>>, vector<4x1xf32>
    %19 = arith.subf %18, %16 : vector<4x1xf32>
    %20 = math.exp %19 : vector<4x1xf32>
    %21 = arith.mulf %17, %20 : vector<4x1xf32>
    %22 = vector.broadcast %16 : vector<4x1xf32> to vector<4x10xf32>
    %23 = arith.subf %11, %22 : vector<4x10xf32>
    %24 = math.exp %23 : vector<4x10xf32>
    %cst_12 = arith.constant dense<0.000000e+00> : vector<4xf32>
    %25 = vector.multi_reduction <add>, %24, %cst_12 [1] : vector<4x10xf32> to vector<4xf32>
    %26 = vector.shape_cast %25 : vector<4xf32> to vector<4x1xf32>
    %27 = arith.addf %21, %26 : vector<4x1xf32>
    %c0_13 = arith.constant 0 : index
    %c0_14 = arith.constant 0 : index
    %28 = vector.load %arg5[%c0_13, %c0_14] : memref<4x1xf32, #tpu.memory_space<vmem>>, vector<4x1xf32>
    tpu.vector_store %arg5[%c0_13, %c0_14], %27 {strides = array<i32>} : memref<4x1xf32, #tpu.memory_space<vmem>>, vector<4x1xf32>,
    %c0_15 = arith.constant 0 : index
    %c0_16 = arith.constant 0 : index
    %29 = vector.load %arg6[%c0_15, %c0_16] : memref<4x1xf32, #tpu.memory_space<vmem>>, vector<4x1xf32>
    %30 = vector.broadcast %12 : vector<4x1xi32> to vector<4x10xi32>
    %31 = arith.cmpi eq, %7, %30 : vector<4x10xi32>
    %32 = arith.andi %31, %9 : vector<4x10xi1>
    %cst_17 = arith.constant 0.000000e+00 : f32
    %33 = vector.broadcast %cst_17 : f32 to vector<4x10xf32>
    %34 = arith.select %32, %11, %33 : vector<4x10xi1>, vector<4x10xf32>
    %cst_18 = arith.constant dense<0.000000e+00> : vector<4xf32>
    %35 = vector.multi_reduction <add>, %34, %cst_18 [1] : vector<4x10xf32> to vector<4xf32>
    %36 = vector.shape_cast %35 : vector<4xf32> to vector<4x1xf32>
    %37 = arith.addf %29, %36 : vector<4x1xf32>
    %c0_19 = arith.constant 0 : index
    %c0_20 = arith.constant 0 : index
    %38 = vector.load %arg6[%c0_19, %c0_20] : memref<4x1xf32, #tpu.memory_space<vmem>>, vector<4x1xf32>
    tpu.vector_store %arg6[%c0_19, %c0_20], %37 {strides = array<i32>} : memref<4x1xf32, #tpu.memory_space<vmem>>, vector<4x1xf32>,
    %c0_21 = arith.constant 0 : index
    %c0_22 = arith.constant 0 : index
    %39 = vector.load %arg4[%c0_21, %c0_22] : memref<4x1xf32, #tpu.memory_space<vmem>>, vector<4x1xf32>
    tpu.vector_store %arg4[%c0_21, %c0_22], %16 {strides = array<i32>} : memref<4x1xf32, #tpu.memory_space<vmem>>, vector<4x1xf32>,
    %c0_i32_23 = arith.constant 0 : i32
    %40 = arith.cmpi eq, %arg0, %c0_i32_23 : i32
    %41 = arith.extui %40 : i1 to i32
    %c0_i32_24 = arith.constant 0 : i32
    %42 = arith.cmpi ne, %41, %c0_i32_24 : i32
    scf.if %42 {
      %c0_25 = arith.constant 0 : index
      %c0_26 = arith.constant 0 : index
      %43 = vector.load %arg4[%c0_25, %c0_26] : memref<4x1xf32, #tpu.memory_space<vmem>>, vector<4x1xf32>
      %c0_27 = arith.constant 0 : index
      %c0_28 = arith.constant 0 : index
      %44 = vector.load %arg5[%c0_27, %c0_28] : memref<4x1xf32, #tpu.memory_space<vmem>>, vector<4x1xf32>
      %45 = math.log %44 : vector<4x1xf32>
      %46 = arith.addf %43, %45 : vector<4x1xf32>
      %c0_29 = arith.constant 0 : index
      %c0_30 = arith.constant 0 : index
      %47 = vector.load %arg6[%c0_29, %c0_30] : memref<4x1xf32, #tpu.memory_space<vmem>>, vector<4x1xf32>
      %48 = arith.subf %46, %47 : vector<4x1xf32>
      %49 = vector.shape_cast %48 : vector<4x1xf32> to vector<1x4x1xf32>
      %cst_31 = arith.constant dense<0.000000e+00> : vector<1xf32>
      %50 = vector.multi_reduction <add>, %49, %cst_31 [1, 2] : vector<1x4x1xf32> to vector<1xf32>
      %51 = vector.shape_cast %50 : vector<1xf32> to vector<1x1x1xf32>
      %52 = vector.extract %51[0, 0, 0] : f32 from vector<1x1x1xf32>
      %53 = vector.broadcast %52 : f32 to vector<1x1xf32>
      %cst_32 = arith.constant 4.000000e+00 : f32
      %54 = vector.broadcast %cst_32 : f32 to vector<1x1xf32>
      %55 = arith.divf %53, %54 : vector<1x1xf32>
      %c0_33 = arith.constant 0 : index
      %c0_34 = arith.constant 0 : index
      %56 = vector.load %arg3[%c0_33, %c0_34] : memref<1x1xf32, #tpu.memory_space<vmem>>, vector<1x1xf32>
      tpu.vector_store %arg3[%c0_33, %c0_34], %55 {strides = array<i32>} : memref<1x1xf32, #tpu.memory_space<vmem>>, vector<1x1xf32>,
    } else {
    }
    return
  }
  func.func @transform_0(%arg0: i32) -> (i32, i32) {
    %c0_i32 = arith.constant 0 : i32
    %c0_i32_0 = arith.constant 0 : i32
    %c0_i32_1 = arith.constant 0 : i32
    return %c0_i32, %c0_i32_0 : i32, i32
  }
  func.func @transform_1(%arg0: i32) -> (i32, i32) {
    %c0_i32 = arith.constant 0 : i32
    %c0_i32_0 = arith.constant 0 : i32
    return %c0_i32, %arg0 : i32, i32
  }
  func.func @transform_2(%arg0: i32) -> (i32, i32) {
    %c0_i32 = arith.constant 0 : i32
    %c0_i32_0 = arith.constant 0 : i32
    %c0_i32_1 = arith.constant 0 : i32
    return %c0_i32, %c0_i32_0 : i32, i32
  }
}

</mosaic_0001>

<bundles_post_ra>
// kernel: tpu_custom_call.1
= control target key start
LH: loop header
LB: loop body
LE: loop exit
PB: predicated region body
PF: predicated region fallthrough
CT: control target
= control target key end

     0   :  { %v22_v0 = vlaneseq  ;;  %s182_s0 = inlined_call_operand.vmem [shape: s32[4,1], index: 0, kind: input, shape index: {}]   ;;  %s183_s1 = inlined_call_operand.vmem [shape: f32[4,10], index: 1, kind: input, shape index: {}]   ;;  %s184_s2 = inlined_call_operand.hbm [shape: f32[1,1], index: 2, kind: output, shape index: {}]  }
   0x1   :  { %7 = vsyncpa [#allocation6], 0  ;;  %v20_v1 = vld [vmem:[%s183_s1] sm:$0xf]  ;;  %vm30_vm0 = vcmask 76800   ;;  %vm16_vm2 = vcmask 3072  }
   0x2   :  { %v23_v2 = vand.u32 127, %v22_v0  ;;  %v142_v5 = vmov -inf   ;;  %v143_v6 = vmov 0   ;;  %v28_v7 = vld [vmem:[%s182_s0] sm:$0xf]  ;;  %v144_v8 = vmov 0.0  }
   0x3   :  { %17 = vst.msk [vmem:[#allocation2] sm:$0xf] %vm16_vm2, %v142_v5  ;;  %112 = vset.pattern.permute.xlu0 %v143_v6  ;;  %113 = vset.pattern.permute.xlu1 %v143_v6  ;;  %18 = vst.msk [vmem:[#allocation3] sm:$0xf] %vm16_vm2, %v144_v8  ;;  %s145_s0 = smov [#allocation5]   ;;  %vm90_vm5 = vcmask 0  }
   0x4   :  { %vm26_vm1 = vcmp.lt.s32.totalorder %v23_v2, 10  ;;  %56 = vperm.xlu1 %113, %v28_v7   ;;  %19 = vst.msk [vmem:[#allocation4] sm:$0xf] %vm16_vm2, %v144_v8  ;;  %s98_s1 = sshll.u32 %s145_s0, 4  ;;  %s99_s1 = int_to_ptr.vmem [resolvable:$true] %s98_s1 }
   0x5   :  { %v27_v3 = vsel %vm26_vm1, %v20_v1, -inf  ;;  %s120_s14 = scalar_lea.vmem %s99_s1, 16  ;;  %s124_s15 = scalar_lea.vmem %s99_s1, 32 }
   0x6   :  { %v31_v4 = vsel %vm30_vm0, %v27_v3, -inf  ;;  %p121_p0 = scmp.ne.s32.totalorder %s99_s1, %s120_s14  ;;  %p125_p1 = scmp.lt.s32.totalorder %s99_s1, %s99_s1 }
   0x7   :  { %32 = vmax.xlane.f32.xlu0 %v31_v4  ;;  %p126_p2 = scmp.lt.s32.totalorder %s124_s15, %s120_s14 }
   0x9   :  { %p127_p3 = por %p126_p2, %p125_p1 }
   0xa   :  { %v29_v9 = vld [vmem:[#allocation2] sm:$0xf]  ;;  %v35_v23 = vld [vmem:[#allocation3] sm:$0xf] }
   0xb   :  { %v54_v27 = vld [vmem:[#allocation4] sm:$0xf]  ;;  %p128_p4 = pnand %p127_p3, %p121_p0 }
  0x7f   :  { %v57_v16 = vpop.permute.xlu1 %56 }
  0x80   :  { %vm58_vm3 = vcmp.eq.s32.totalorder %v23_v2, %v57_v16 }
  0x81   :  { %vm59_vm4 = vmand %vm58_vm3, %vm26_vm1 }
  0x82   :  { %v60_v18 = vsel %vm59_vm4, %v27_v3, 0.0 }
  0x83   :  { %v61_v20 = vsel %vm30_vm0, %v60_v18, 0.0 }
  0x90   :  { %v33_v10 = vpop.xlane.xlu0 %32 }
  0x91   :  { %v34_v11 = vmax.f32 %v29_v9, %v33_v10 }
  0x93   :  { %v36_v12 = vsub.f32 %v29_v9, %v34_v11  ;;  %66 = vst.msk [vmem:[#allocation2] sm:$0xf] %vm16_vm2, %v34_v11  ;;  %42 = vperm.xlu0 %112, %v34_v11  }
  0x95   :  { %v37_v21 = vmul.f32 1.442695, %v36_v12 }
  0x9a   :  { %v70_v33 = vld [vmem:[#allocation2] sm:$0xf] }
 0x10e   :  { %v43_v13 = vpop.permute.xlu0 %42 }
 0x10f   :  { %v45_v14 = vsub.f32 %v27_v3, %v43_v13 }
 0x111   :  { %v46_v15 = vmul.f32 1.442695, %v45_v14 }
 0x113   :  { %114 = vpow2.f32 %v46_v15 }
 0x114   :  { %116 = vpow2.f32 %v37_v21 }
 0x120   :  { %v115_v17 = vpop.eup %114 }
 0x121   :  { %v48_v19 = vsel %vm30_vm0, %v115_v17, 0.0  ;;  %v117_v22 = vpop.eup %116 }
 0x122   :  { %49 = vadd.xlane.f32.xlu1 %v48_v19  ;;  %v39_v24 = vmul.f32 %v117_v22, %v35_v23 }
 0x126   :  { %62 = vadd.xlane.f32.xlu1 %v61_v20 }
 0x1ab   :  { %v50_v25 = vpop.xlane.xlu1 %49 }
 0x1ac   :  { %v51_v26 = vadd.f32 %v50_v25, %v39_v24 }
 0x1ae   :  { %53 = vst.msk [vmem:[#allocation3] sm:$0xf] %vm16_vm2, %v51_v26 }
 0x1af   :  { %v63_v28 = vpop.xlane.xlu1 %62 }
 0x1b0   :  { %v64_v29 = vadd.f32 %v63_v28, %v54_v27 }
 0x1b2   :  { %65 = vst.msk [vmem:[#allocation4] sm:$0xf] %vm16_vm2, %v64_v29 }
 0x1b5   :  { %v71_v30 = vld [vmem:[#allocation3] sm:$0xf] }
 0x1b6   :  { %118 = vlog2.f32 %v71_v30 }
 0x1b9   :  { %v75_v34 = vld [vmem:[#allocation4] sm:$0xf] }
 0x1c3   :  { %v119_v31 = vpop.eup %118 }
 0x1c4   :  { %v73_v32 = vmul.f32 0.6931472, %v119_v31 }
 0x1c6   :  { %v74_v35 = vadd.f32 %v73_v32, %v70_v33 }
 0x1c8   :  { %v76_v36 = vsub.f32 %v74_v35, %v75_v34 }
 0x1ca   :  { %v77_v37 = vsel %vm16_vm2, %v76_v36, 0.0 }
 0x1cb   :  { %78 = vadd.xlane.f32.xlu1 %v77_v37 }
 0x254   :  { %v79_v38 = vpop.xlane.xlu1 %78 }
 0x255   :  { %v80_v39 = vrot.slane %v79_v38, 4 }
 0x257   :  { %v81_v40 = vadd.f32 %v80_v39, %v79_v38 }
 0x259   :  { %v82_v41 = vrot.slane %v81_v40, 2 }
 0x25b   :  { %v83_v42 = vadd.f32 %v82_v41, %v81_v40 }
 0x25d   :  { %v84_v43 = vrot.slane %v83_v42, 1 }
 0x25f   :  { %v85_v44 = vadd.f32 %v84_v43, %v83_v42 }
 0x261   :  { %106 = vpush %v85_v44 }
 0x292   :  { %s107_s13 = spop %106 }
 0x293   :  { %v87_v45 = vstv %s107_s13 }
 0x294   :  { %v89_v46 = vmul.f32 0.25, %v87_v45 }
 0x296   :  { %91 = vst.msk [vmem:[#allocation5] sm:$0x1] %vm90_vm5, %v89_v46 }
 0x297   :  { %131 = shalt.err (!%p128_p4)
}
 0x298   :  { %101 = dma.vmem_to_hbm [thread:$0]  %s99_s1, 16, %s184_s2, [#allocation6]  }
 0x299   :  { %140 = dma.done.wait [#allocation6], 16  }
 0x29a   :  { %141 = vsyncadd [#allocation6], 4294967280 }
 0x29b   :  { %105 = vsyncpa [#allocation6], 1 }

</bundles_post_ra>
